<compile_context>
chip_gen: v7x
topology: tpu7x:2x2x1
jax: 0.10.0
libtpu: 0.0.40
codegen_flags: <defaults>
</compile_context>

<pallas_src>
import jax
import jax.numpy as jnp
from jax.experimental import pallas as pl
from jax.experimental.pallas import tpu as pltpu

LEAKY_SLOPE = 0.01     # F.leaky_relu default negative_slope
_BN_EPS = 1e-5
LANE = 128             # batch lives on the lane axis -> tiles are multiples of 128
MAX_TILE_B = 2048      # max batch tile; a few MiB of VMEM even at 2048


def _leaky_relu(x):
    return jnp.where(x > 0, x, LEAKY_SLOPE * x)


def _round_up(x, m):
    return (x + m - 1) // m * m


def _mlp_kernel(x_ref,                       # (2D, tile_b) bf16  = concat(u, m).T
                w1_ref, b1_ref,              # (256, 2D) bf16, (256, 1) f32  [BN1 folded]
                w2_ref, b2_ref,              # (128, 256) bf16, (128, 1) f32 [BN2 folded]
                w3_ref, b3_ref,              # (64, 128)  bf16, (64, 1)  f32
                w4_ref, b4_ref,              # (64, 1) f32,     (1, 1)   f32
                out_ref):                    # (1, tile_b) f32
    """Fused 4-layer MLP on one feature-major batch tile (batch on lanes).

    One K=128 matmul for layer 1 (concat already merged on the host side),
    bf16 matmul operands, f32 accumulation/elementwise.  Final 64->1 layer is
    a VPU multiply + XLU sublane reduction (no N=1 MXU matmul).
    """
    # Layer 1 (BN1 folded):  (256, 2D) @ (2D, tile_b)
    h = jnp.dot(w1_ref[...], x_ref[...],
                preferred_element_type=jnp.float32) + b1_ref[...]
    h = _leaky_relu(h)                                          # (256, tile_b) f32

    # Layer 2 (BN2 folded):  (128, 256) @ (256, tile_b)
    h = jnp.dot(w2_ref[...], h.astype(jnp.bfloat16),
                preferred_element_type=jnp.float32) + b2_ref[...]
    h = _leaky_relu(h)                                          # (128, tile_b)

    # Layer 3:  (64, 128) @ (128, tile_b)
    h = jnp.dot(w3_ref[...], h.astype(jnp.bfloat16),
                preferred_element_type=jnp.float32) + b3_ref[...]
    h = _leaky_relu(h)                                          # (64, tile_b)

    # Output layer (64 -> 1) off the MXU: scale by w4 column, reduce sublanes.
    out_ref[...] = (jnp.sum(h * w4_ref[...], axis=0, keepdims=True)
                    + b4_ref[...])                              # (1, tile_b)


def prepare_params(params):
    """One-time host prep: BN fold, transposes, bf16 casts.

    NOTE: weights here use the (in_features, out_features) storage convention
    of init_params().  Real PyTorch nn.Linear weights are stored (out, in) and
    must be transposed before being passed into this layout.
    """
    def bn_fold(w, b, gamma, beta, mean, var):
        scale = gamma / jnp.sqrt(var + _BN_EPS)                 # per out-channel
        return w * scale[None, :], (b - mean) * scale + beta

    w1f, b1f = bn_fold(params["w1"], params["b1"],
                       params["bn1_gamma"], params["bn1_beta"],
                       params["bn1_mean"], params["bn1_var"])
    w2f, b2f = bn_fold(params["w2"], params["b2"],
                       params["bn2_gamma"], params["bn2_beta"],
                       params["bn2_mean"], params["bn2_var"])

    return dict(
        user_emb=params["user_emb"].astype(jnp.bfloat16),       # (num_users, D)
        movie_emb=params["movie_emb"].astype(jnp.bfloat16),     # (num_movies, D)
        w1t=w1f.T.astype(jnp.bfloat16),                         # (256, 2D)
        b1=b1f.reshape(-1, 1).astype(jnp.float32),              # (256, 1)
        w2t=w2f.T.astype(jnp.bfloat16),                         # (128, 256)
        b2=b2f.reshape(-1, 1).astype(jnp.float32),              # (128, 1)
        w3t=params["w3"].T.astype(jnp.bfloat16),                # (64, 128)
        b3=params["b3"].reshape(-1, 1).astype(jnp.float32),     # (64, 1)
        w4=params["w4"].reshape(-1, 1).astype(jnp.float32),     # (64, 1)
        b4=params["b4"].reshape(1, 1).astype(jnp.float32),      # (1, 1)
    )


@jax.jit
def recommender_forward(user_ids, movie_ids, prep):
    """Embedding gather in XLA (fuses with concat/transpose), MLP in Pallas."""
    u = prep["user_emb"][user_ids]                              # (B, D) bf16
    m = prep["movie_emb"][movie_ids]                            # (B, D) bf16
    x = jnp.concatenate([u, m], axis=1)                         # (B, 2D) bf16
    B, F = x.shape

    # ---- Padding-aware tile selection (batch is the lane axis) -----------
    num_tiles = pl.cdiv(B, MAX_TILE_B)
    if num_tiles == 1 and B >= 2 * LANE:
        num_tiles = 2                         # keep both v7x TensorCores busy
    tile_b = _round_up(pl.cdiv(B, num_tiles), LANE)
    Bp = num_tiles * tile_b

    x_t = x.T                                                   # (2D, B)
    if Bp != B:
        x_t = jnp.pad(x_t, ((0, 0), (0, Bp - B)))               # (2D, Bp)

    weights = (prep["w1t"], prep["b1"], prep["w2t"], prep["b2"],
               prep["w3t"], prep["b3"], prep["w4"], prep["b4"])

    def const_spec(a):
        return pl.BlockSpec(a.shape, lambda i, nd=a.ndim: (0,) * nd)

    flops = 2 * Bp * (F * 256 + 256 * 128 + 128 * 64 + 64 * 1)
    bytes_accessed = (x_t.size * x_t.dtype.itemsize + Bp * 4
                      + sum(int(w.size) * w.dtype.itemsize for w in weights))

    out = pl.pallas_call(
        _mlp_kernel,
        out_shape=jax.ShapeDtypeStruct((1, Bp), jnp.float32),
        grid=(num_tiles,),
        in_specs=[
            pl.BlockSpec((F, tile_b), lambda i: (0, i)),        # activations (pipelined)
        ] + [const_spec(w) for w in weights],                   # weights VMEM-resident
        out_specs=pl.BlockSpec((1, tile_b), lambda i: (0, i)),  # lane-dense output
        compiler_params=pltpu.CompilerParams(
            dimension_semantics=("parallel",)),                 # megacore on v7x
        cost_estimate=pl.CostEstimate(
            flops=flops, transcendentals=0, bytes_accessed=bytes_accessed),
    )(x_t, *weights)

    return out[0, :B]                                           # matches .squeeze()


def init_params(key, num_users, num_movies, embedding_dim=64):
    keys = jax.random.split(key, 10)

    def xavier_uniform(k, shape):
        fan_in, fan_out = shape
        bound = jnp.sqrt(6.0 / (fan_in + fan_out))
        return jax.random.uniform(k, shape, jnp.float32, -bound, bound)

    def linear_init(kw, kb, in_f, out_f):
        # PyTorch nn.Linear default init; weight stored (in, out) here.
        bound = 1.0 / jnp.sqrt(jnp.float32(in_f))
        w = jax.random.uniform(kw, (in_f, out_f), jnp.float32, -bound, bound)
        b = jax.random.uniform(kb, (out_f,), jnp.float32, -bound, bound)
        return w, b

    w1, b1 = linear_init(keys[2], keys[3], embedding_dim * 2, 256)
    w2, b2 = linear_init(keys[4], keys[5], 256, 128)
    w3, b3 = linear_init(keys[6], keys[7], 128, 64)
    w4, b4 = linear_init(keys[8], keys[9], 64, 1)

    return dict(
        user_emb=xavier_uniform(keys[0], (num_users, embedding_dim)),
        movie_emb=xavier_uniform(keys[1], (num_movies, embedding_dim)),
        w1=w1, b1=b1, w2=w2, b2=b2, w3=w3, b3=b3, w4=w4, b4=b4,
        # BatchNorm1d defaults: gamma=1, beta=0, running_mean=0, running_var=1
        bn1_gamma=jnp.ones((256,), jnp.float32),
        bn1_beta=jnp.zeros((256,), jnp.float32),
        bn1_mean=jnp.zeros((256,), jnp.float32),
        bn1_var=jnp.ones((256,), jnp.float32),
        bn2_gamma=jnp.ones((128,), jnp.float32),
        bn2_beta=jnp.zeros((128,), jnp.float32),
        bn2_mean=jnp.zeros((128,), jnp.float32),
        bn2_var=jnp.ones((128,), jnp.float32),
    )


def reference_forward(user_ids, movie_ids, params):
    """Pure-JAX f32 reference (eval mode) for correctness check."""
    u = params["user_emb"][user_ids]
    m = params["movie_emb"][movie_ids]
    x = jnp.concatenate([u, m], axis=1)

    def bn(x, g, b, mu, var):
        return (x - mu) / jnp.sqrt(var + _BN_EPS) * g + b

    h = x @ params["w1"] + params["b1"]
    h = _leaky_relu(bn(h, params["bn1_gamma"], params["bn1_beta"],
                       params["bn1_mean"], params["bn1_var"]))
    h = h @ params["w2"] + params["b2"]
    h = _leaky_relu(bn(h, params["bn2_gamma"], params["bn2_beta"],
                       params["bn2_mean"], params["bn2_var"]))
    h = _leaky_relu(h @ params["w3"] + params["b3"])
    return jnp.squeeze(h @ params["w4"] + params["b4"], axis=-1)


if __name__ == "__main__":
    key = jax.random.PRNGKey(0)
    k_param, k_u, k_m, k_u2, k_m2 = jax.random.split(key, 5)

    num_users, num_movies, embedding_dim = 32, 48, 64
    params = init_params(k_param, num_users, num_movies, embedding_dim)
    prep = prepare_params(params)      # one-time: BN fold, transposes, bf16 casts

    # Small batch (single grid step, heavy lane padding path).
    batch = 8
    user_ids = jax.random.randint(k_u, (batch,), 0, num_users, dtype=jnp.int32)
    movie_ids = jax.random.randint(k_m, (batch,), 0, num_movies, dtype=jnp.int32)

    out = jax.block_until_ready(recommender_forward(user_ids, movie_ids, prep))
    ref = reference_forward(user_ids, movie_ids, params)
    assert out.shape == (batch,), out.shape
    assert jnp.allclose(out, ref, atol=3e-2, rtol=3e-2), (out, ref)

    # Larger batch: exercises the 2-tile grid (v7x dual-TC path) and padding.
    batch2 = 600
    user_ids2 = jax.random.randint(k_u2, (batch2,), 0, num_users, dtype=jnp.int32)
    movie_ids2 = jax.random.randint(k_m2, (batch2,), 0, num_movies, dtype=jnp.int32)

    out2 = jax.block_until_ready(recommender_forward(user_ids2, movie_ids2, prep))
    ref2 = reference_forward(user_ids2, movie_ids2, params)
    assert out2.shape == (batch2,), out2.shape
    assert jnp.allclose(out2, ref2, atol=3e-2, rtol=3e-2)

    print("KERNEL_OK")
</pallas_src>

<mosaic_0001>
module attributes {stable_mosaic.version = 11 : i64} {
  func.func @_mlp_kernel(%arg0: i32, %arg1: memref<128x128xbf16, #tpu.memory_space<vmem>>, %arg2: memref<256x128xbf16, #tpu.memory_space<vmem>>, %arg3: memref<256x1xf32, #tpu.memory_space<vmem>>, %arg4: memref<128x256xbf16, #tpu.memory_space<vmem>>, %arg5: memref<128x1xf32, #tpu.memory_space<vmem>>, %arg6: memref<64x128xbf16, #tpu.memory_space<vmem>>, %arg7: memref<64x1xf32, #tpu.memory_space<vmem>>, %arg8: memref<64x1xf32, #tpu.memory_space<vmem>>, %arg9: memref<1x1xf32, #tpu.memory_space<vmem>>, %arg10: memref<1x128xf32, #tpu.memory_space<vmem>>) attributes {dimension_semantics = [#tpu.dimension_semantics<parallel>], iteration_bounds = array<i64: 1>, scalar_prefetch = 0 : i64, scratch_operands = 0 : i64, tpu.core_type = #tpu.core_type<tc>, window_params = [{transform_indices = @transform_0, window_bounds = array<i64: 128, 128>}, {pipeline_mode = #tpu.pipeline_mode<synchronous>, transform_indices = @transform_1, window_bounds = array<i64: 256, 128>}, {pipeline_mode = #tpu.pipeline_mode<synchronous>, transform_indices = @transform_2, window_bounds = array<i64: 256, 1>}, {pipeline_mode = #tpu.pipeline_mode<synchronous>, transform_indices = @transform_3, window_bounds = array<i64: 128, 256>}, {pipeline_mode = #tpu.pipeline_mode<synchronous>, transform_indices = @transform_4, window_bounds = array<i64: 128, 1>}, {pipeline_mode = #tpu.pipeline_mode<synchronous>, transform_indices = @transform_5, window_bounds = array<i64: 64, 128>}, {pipeline_mode = #tpu.pipeline_mode<synchronous>, transform_indices = @transform_6, window_bounds = array<i64: 64, 1>}, {pipeline_mode = #tpu.pipeline_mode<synchronous>, transform_indices = @transform_7, window_bounds = array<i64: 64, 1>}, {pipeline_mode = #tpu.pipeline_mode<synchronous>, transform_indices = @transform_8, window_bounds = array<i64: 1, 1>}, {transform_indices = @transform_9, window_bounds = array<i64: 1, 128>}]} {
    %c0 = arith.constant 0 : index
    %c0_0 = arith.constant 0 : index
    %0 = vector.load %arg2[%c0, %c0_0] : memref<256x128xbf16, #tpu.memory_space<vmem>>, vector<256x128xbf16>
    %c0_1 = arith.constant 0 : index
    %c0_2 = arith.constant 0 : index
    %1 = vector.load %arg1[%c0_1, %c0_2] : memref<128x128xbf16, #tpu.memory_space<vmem>>, vector<128x128xbf16>
    %cst = arith.constant dense<0.000000e+00> : vector<256x128xf32>
    %2 = tpu.matmul %0, %1, %cst {dimension_numbers = #tpu.dot_dimension_numbers<[1], [0], [0], [1], [0, 0, 1, 1], [], []>} : vector<256x128xbf16>, vector<128x128xbf16>, vector<256x128xf32> -> vector<256x128xf32>
    %c0_3 = arith.constant 0 : index
    %c0_4 = arith.constant 0 : index
    %3 = vector.load %arg3[%c0_3, %c0_4] : memref<256x1xf32, #tpu.memory_space<vmem>>, vector<256x1xf32>
    %4 = vector.broadcast %3 : vector<256x1xf32> to vector<256x128xf32>
    %5 = arith.addf %2, %4 : vector<256x128xf32>
    %cst_5 = arith.constant 0.000000e+00 : f32
    %6 = vector.broadcast %cst_5 : f32 to vector<256x128xf32>
    %7 = arith.cmpf ogt, %5, %6 : vector<256x128xf32>
    %cst_6 = arith.constant 0.00999999977 : f32
    %8 = vector.broadcast %cst_6 : f32 to vector<256x128xf32>
    %9 = arith.mulf %8, %5 : vector<256x128xf32>
    %10 = arith.select %7, %5, %9 : vector<256x128xi1>, vector<256x128xf32>
    %c0_7 = arith.constant 0 : index
    %c0_8 = arith.constant 0 : index
    %11 = vector.load %arg4[%c0_7, %c0_8] : memref<128x256xbf16, #tpu.memory_space<vmem>>, vector<128x256xbf16>
    %12 = arith.truncf %10 : vector<256x128xf32> to vector<256x128xbf16>
    %cst_9 = arith.constant dense<0.000000e+00> : vector<128x128xf32>
    %13 = tpu.matmul %11, %12, %cst_9 {dimension_numbers = #tpu.dot_dimension_numbers<[1], [0], [0], [1], [0, 0, 1, 1], [], []>} : vector<128x256xbf16>, vector<256x128xbf16>, vector<128x128xf32> -> vector<128x128xf32>
    %c0_10 = arith.constant 0 : index
    %c0_11 = arith.constant 0 : index
    %14 = vector.load %arg5[%c0_10, %c0_11] : memref<128x1xf32, #tpu.memory_space<vmem>>, vector<128x1xf32>
    %15 = vector.broadcast %14 : vector<128x1xf32> to vector<128x128xf32>
    %16 = arith.addf %13, %15 : vector<128x128xf32>
    %cst_12 = arith.constant 0.000000e+00 : f32
    %17 = vector.broadcast %cst_12 : f32 to vector<128x128xf32>
    %18 = arith.cmpf ogt, %16, %17 : vector<128x128xf32>
    %cst_13 = arith.constant 0.00999999977 : f32
    %19 = vector.broadcast %cst_13 : f32 to vector<128x128xf32>
    %20 = arith.mulf %19, %16 : vector<128x128xf32>
    %21 = arith.select %18, %16, %20 : vector<128x128xi1>, vector<128x128xf32>
    %c0_14 = arith.constant 0 : index
    %c0_15 = arith.constant 0 : index
    %22 = vector.load %arg6[%c0_14, %c0_15] : memref<64x128xbf16, #tpu.memory_space<vmem>>, vector<64x128xbf16>
    %23 = arith.truncf %21 : vector<128x128xf32> to vector<128x128xbf16>
    %cst_16 = arith.constant dense<0.000000e+00> : vector<64x128xf32>
    %24 = tpu.matmul %22, %23, %cst_16 {dimension_numbers = #tpu.dot_dimension_numbers<[1], [0], [0], [1], [0, 0, 1, 1], [], []>} : vector<64x128xbf16>, vector<128x128xbf16>, vector<64x128xf32> -> vector<64x128xf32>
    %c0_17 = arith.constant 0 : index
    %c0_18 = arith.constant 0 : index
    %25 = vector.load %arg7[%c0_17, %c0_18] : memref<64x1xf32, #tpu.memory_space<vmem>>, vector<64x1xf32>
    %26 = vector.broadcast %25 : vector<64x1xf32> to vector<64x128xf32>
    %27 = arith.addf %24, %26 : vector<64x128xf32>
    %cst_19 = arith.constant 0.000000e+00 : f32
    %28 = vector.broadcast %cst_19 : f32 to vector<64x128xf32>
    %29 = arith.cmpf ogt, %27, %28 : vector<64x128xf32>
    %cst_20 = arith.constant 0.00999999977 : f32
    %30 = vector.broadcast %cst_20 : f32 to vector<64x128xf32>
    %31 = arith.mulf %30, %27 : vector<64x128xf32>
    %32 = arith.select %29, %27, %31 : vector<64x128xi1>, vector<64x128xf32>
    %c0_21 = arith.constant 0 : index
    %c0_22 = arith.constant 0 : index
    %33 = vector.load %arg8[%c0_21, %c0_22] : memref<64x1xf32, #tpu.memory_space<vmem>>, vector<64x1xf32>
    %34 = vector.broadcast %33 : vector<64x1xf32> to vector<64x128xf32>
    %35 = arith.mulf %32, %34 : vector<64x128xf32>
    %cst_23 = arith.constant dense<0.000000e+00> : vector<128xf32>
    %36 = vector.multi_reduction <add>, %35, %cst_23 [0] : vector<64x128xf32> to vector<128xf32>
    %37 = vector.shape_cast %36 : vector<128xf32> to vector<1x128xf32>
    %c0_24 = arith.constant 0 : index
    %c0_25 = arith.constant 0 : index
    %38 = vector.load %arg9[%c0_24, %c0_25] : memref<1x1xf32, #tpu.memory_space<vmem>>, vector<1x1xf32>
    %39 = vector.broadcast %38 : vector<1x1xf32> to vector<1x128xf32>
    %40 = arith.addf %37, %39 : vector<1x128xf32>
    %c0_26 = arith.constant 0 : index
    %c0_27 = arith.constant 0 : index
    %41 = vector.load %arg10[%c0_26, %c0_27] : memref<1x128xf32, #tpu.memory_space<vmem>>, vector<1x128xf32>
    tpu.vector_store %arg10[%c0_26, %c0_27], %40 {strides = array<i32>} : memref<1x128xf32, #tpu.memory_space<vmem>>, vector<1x128xf32>,
    return
  }
  func.func @transform_0(%arg0: i32) -> (i32, i32) {
    %c0_i32 = arith.constant 0 : i32
    %c0_i32_0 = arith.constant 0 : i32
    return %c0_i32, %arg0 : i32, i32
  }
  func.func @transform_1(%arg0: i32) -> (i32, i32) {
    %c0_i32 = arith.constant 0 : i32
    %c0_i32_0 = arith.constant 0 : i32
    %c0_i32_1 = arith.constant 0 : i32
    return %c0_i32, %c0_i32_0 : i32, i32
  }
  func.func @transform_2(%arg0: i32) -> (i32, i32) {
    %c0_i32 = arith.constant 0 : i32
    %c0_i32_0 = arith.constant 0 : i32
    %c0_i32_1 = arith.constant 0 : i32
    return %c0_i32, %c0_i32_0 : i32, i32
  }
  func.func @transform_3(%arg0: i32) -> (i32, i32) {
    %c0_i32 = arith.constant 0 : i32
    %c0_i32_0 = arith.constant 0 : i32
    %c0_i32_1 = arith.constant 0 : i32
    return %c0_i32, %c0_i32_0 : i32, i32
  }
  func.func @transform_4(%arg0: i32) -> (i32, i32) {
    %c0_i32 = arith.constant 0 : i32
    %c0_i32_0 = arith.constant 0 : i32
    %c0_i32_1 = arith.constant 0 : i32
    return %c0_i32, %c0_i32_0 : i32, i32
  }
  func.func @transform_5(%arg0: i32) -> (i32, i32) {
    %c0_i32 = arith.constant 0 : i32
    %c0_i32_0 = arith.constant 0 : i32
    %c0_i32_1 = arith.constant 0 : i32
    return %c0_i32, %c0_i32_0 : i32, i32
  }
  func.func @transform_6(%arg0: i32) -> (i32, i32) {
    %c0_i32 = arith.constant 0 : i32
    %c0_i32_0 = arith.constant 0 : i32
    %c0_i32_1 = arith.constant 0 : i32
    return %c0_i32, %c0_i32_0 : i32, i32
  }
  func.func @transform_7(%arg0: i32) -> (i32, i32) {
    %c0_i32 = arith.constant 0 : i32
    %c0_i32_0 = arith.constant 0 : i32
    %c0_i32_1 = arith.constant 0 : i32
    return %c0_i32, %c0_i32_0 : i32, i32
  }
  func.func @transform_8(%arg0: i32) -> (i32, i32) {
    %c0_i32 = arith.constant 0 : i32
    %c0_i32_0 = arith.constant 0 : i32
    %c0_i32_1 = arith.constant 0 : i32
    return %c0_i32, %c0_i32_0 : i32, i32
  }
  func.func @transform_9(%arg0: i32) -> (i32, i32) {
    %c0_i32 = arith.constant 0 : i32
    %c0_i32_0 = arith.constant 0 : i32
    return %c0_i32, %arg0 : i32, i32
  }
}

</mosaic_0001>

<bundles_post_ra>
// kernel: recommender_forward.1
= control target key start
LH: loop header
LB: loop body
LE: loop exit
PB: predicated region body
PF: predicated region fallthrough
CT: control target
= control target key end

     0   :  { %v1578_v0 = vmov 0   ;;  %s2082_s2 = inlined_call_operand.vmem [shape: f32[256,1], index: 2, kind: input, shape index: {}]   ;;  %s2083_s0 = inlined_call_operand.vmem [shape: bf16[128,128], index: 0, kind: input, shape index: {}]   ;;  %s2084_s8 = inlined_call_operand.<no memory space> [shape: f32[1,1], index: 8, kind: input, shape index: {}]   ;;  %s2085_s1 = inlined_call_operand.vmem [shape: bf16[256,128], index: 1, kind: input, shape index: {}]   ;;  %s2086_s4 = inlined_call_operand.vmem [shape: f32[128,1], index: 4, kind: input, shape index: {}]   ;;  %s2087_s6 = inlined_call_operand.vmem [shape: f32[64,1], index: 6, kind: input, shape index: {}]   ;;  %s2088_s7 = inlined_call_operand.vmem [shape: f32[64,1], index: 7, kind: input, shape index: {}]   ;;  %s2089_s3 = inlined_call_operand.vmem [shape: bf16[128,256], index: 3, kind: input, shape index: {}]   ;;  %s2090_s5 = inlined_call_operand.vmem [shape: bf16[64,128], index: 5, kind: input, shape index: {}]   ;;  %s2091_s9 = inlined_call_operand.vmem [shape: f32[1,128], index: 9, kind: output, shape index: {}]  }
   0x1   :  { %1525 = vset.pattern.permute.xlu1 %v1578_v0  ;;  %1524 = vset.pattern.permute.xlu0 %v1578_v0  ;;  %v99_v1 = vld [vmem:[%s2082_s2 + $0x80] sm:$0xff]  ;;  %v14_v3 = vstv %s2084_s8  ;;  %v100_v5 = vld [vmem:[%s2082_s2 + $0x88] sm:$0xff]  ;;  %v101_v8 = vld [vmem:[%s2082_s2 + $0x90] sm:$0xff] }
   0x2   :  { %v83_v2 = vld [vmem:[%s2082_s2] sm:$0xff]  ;;  %197 = vperm.xlu0 %1524, %v99_v1   ;;  %15 = vst [vmem:[#allocation2] sm:$0x1] %v14_v3  ;;  %v84_v6 = vld [vmem:[%s2082_s2 + $0x8] sm:$0xff]  ;;  %v102_v9 = vld [vmem:[%s2082_s2 + $0x98] sm:$0xff] }
   0x3   :  { %117 = vperm.xlu1 %1525, %v83_v2   ;;  %v1526_v4 = vld [vmem:[%s2083_s0] sm:$0xff]   ;;  %v1527_v7 = vld [vmem:[%s2083_s0 + $0x8] sm:$0xff]   ;;  %v1528_v10 = vld [vmem:[%s2083_s0 + $0x10] sm:$0xff]  }
   0x4   :  { %1435 = vmatprep.subr.bf16.mxu0 %v1526_v4  ;;  %v85_v11 = vld [vmem:[%s2082_s2 + $0x10] sm:$0xff]  ;;  %v86_v12 = vld [vmem:[%s2082_s2 + $0x18] sm:$0xff]  ;;  %v103_v14 = vld [vmem:[%s2082_s2 + $0xa0] sm:$0xff] }
   0x5   :  { %1436 = vmatpush3.bf16.msra.mxu0 %v1526_v4  ;;  %v1529_v13 = vld [vmem:[%s2083_s0 + $0x18] sm:$0xff]   ;;  %v104_v15 = vld [vmem:[%s2082_s2 + $0xa8] sm:$0xff]  ;;  %v1530_v16 = vld [vmem:[%s2083_s0 + $0x20] sm:$0xff]  }
   0x6   :  { %202 = vperm.xlu0 %1524, %v100_v5   ;;  %1437 = vmatprep.subr.bf16.mxu0 %v1527_v7  ;;  %v1534_v17 = vld [vmem:[%s2085_s1] sm:$0xff]   ;;  %v88_v19 = vld [vmem:[%s2082_s2 + $0x28] sm:$0xff]  ;;  %v105_v21 = vld [vmem:[%s2082_s2 + $0xb0] sm:$0xff] }
   0x7   :  { %122 = vperm.xlu1 %1525, %v84_v6   ;;  %v87_v18 = vld [vmem:[%s2082_s2 + $0x20] sm:$0xff]  ;;  %1451 = vmatprep.mubr.bf16.mxu0 %v1534_v17  ;;  %v1531_v20 = vld [vmem:[%s2083_s0 + $0x28] sm:$0xff]   ;;  %v106_v22 = vld [vmem:[%s2082_s2 + $0xb8] sm:$0xff] }
   0x8   :  { %v1532_v23 = vld [vmem:[%s2083_s0 + $0x30] sm:$0xff]   ;;  %v90_v25 = vld [vmem:[%s2082_s2 + $0x38] sm:$0xff]  ;;  %v107_v27 = vld [vmem:[%s2082_s2 + $0xc0] sm:$0xff] }
   0x9   :  { %1438 = vmatpush3.bf16.msra.mxu0 %v1527_v7  ;;  %v89_v24 = vld [vmem:[%s2082_s2 + $0x30] sm:$0xff]  ;;  %v1533_v26 = vld [vmem:[%s2083_s0 + $0x38] sm:$0xff]   ;;  %v108_v28 = vld [vmem:[%s2082_s2 + $0xc8] sm:$0xff] }
   0xa   :  { %207 = vperm.xlu0 %1524, %v101_v8   ;;  %1439 = vmatprep.subr.bf16.mxu0 %v1528_v10  ;;  %v1535_v29 = vld [vmem:[%s2085_s1 + $0x8] sm:$0xff]   ;;  %v1536_v30 = vld [vmem:[%s2085_s1 + $0x10] sm:$0xff]   ;;  %v91_v31 = vld [vmem:[%s2082_s2 + $0x40] sm:$0xff] }
   0xb   :  { %212 = vperm.xlu1 %1525, %v102_v9   ;;  %v92_v32 = vld [vmem:[%s2082_s2 + $0x48] sm:$0xff]  ;;  %v109_v33 = vld [vmem:[%s2082_s2 + $0xd0] sm:$0xff]  ;;  %v110_v34 = vld [vmem:[%s2082_s2 + $0xd8] sm:$0xff] }
   0xc   :  { %v1537_v35 = vld [vmem:[%s2085_s1 + $0x18] sm:$0xff]   ;;  %v1538_v36 = vld [vmem:[%s2085_s1 + $0x20] sm:$0xff]   ;;  %v93_v37 = vld [vmem:[%s2082_s2 + $0x50] sm:$0xff] }
   0xd   :  { %1440 = vmatpush3.bf16.msra.mxu0 %v1528_v10  ;;  %v94_v38 = vld [vmem:[%s2082_s2 + $0x58] sm:$0xff]  ;;  %v111_v39 = vld [vmem:[%s2082_s2 + $0xe0] sm:$0xff]  ;;  %v112_v40 = vld [vmem:[%s2082_s2 + $0xe8] sm:$0xff] }
   0xe   :  { %127 = vperm.xlu0 %1524, %v85_v11   ;;  %1441 = vmatprep.subr.bf16.mxu0 %v1529_v13  ;;  %v1539_v41 = vld [vmem:[%s2085_s1 + $0x28] sm:$0xff]   ;;  %v1540_v42 = vld [vmem:[%s2085_s1 + $0x30] sm:$0xff]   ;;  %v95_v43 = vld [vmem:[%s2082_s2 + $0x60] sm:$0xff] }
   0xf   :  { %132 = vperm.xlu1 %1525, %v86_v12   ;;  %v96_v44 = vld [vmem:[%s2082_s2 + $0x68] sm:$0xff]  ;;  %v113_v45 = vld [vmem:[%s2082_s2 + $0xf0] sm:$0xff]  ;;  %v114_v46 = vld [vmem:[%s2082_s2 + $0xf8] sm:$0xff] }
  0x10   :  { %v1541_v47 = vld [vmem:[%s2085_s1 + $0x38] sm:$0xff]   ;;  %v1542_v48 = vld [vmem:[%s2085_s1 + $0x40] sm:$0xff]   ;;  %v97_v49 = vld [vmem:[%s2082_s2 + $0x70] sm:$0xff] }
  0x11   :  { %1442 = vmatpush3.bf16.msra.mxu0 %v1529_v13  ;;  %v98_v50 = vld [vmem:[%s2082_s2 + $0x78] sm:$0xff]  ;;  %v708_v51 = vld [vmem:[%s2086_s4] sm:$0xff]  ;;  %v709_v52 = vld [vmem:[%s2086_s4 + $0x8] sm:$0xff] }
  0x12   :  { %217 = vperm.xlu0 %1524, %v103_v14   ;;  %1443 = vmatprep.subr.bf16.mxu0 %v1530_v16  ;;  %v1543_v53 = vld [vmem:[%s2085_s1 + $0x48] sm:$0xff]   ;;  %v1544_v54 = vld [vmem:[%s2085_s1 + $0x50] sm:$0xff]   ;;  %v711_v56 = vld [vmem:[%s2086_s4 + $0x18] sm:$0xff] }
  0x13   :  { %222 = vperm.xlu1 %1525, %v104_v15   ;;  %v710_v55 = vld [vmem:[%s2086_s4 + $0x10] sm:$0xff]  ;;  %v712_v57 = vld [vmem:[%s2086_s4 + $0x20] sm:$0xff]  ;;  %v713_v58 = vld [vmem:[%s2086_s4 + $0x28] sm:$0xff] }
  0x14   :  { %v1545_v59 = vld [vmem:[%s2085_s1 + $0x58] sm:$0xff]   ;;  %v1546_v60 = vld [vmem:[%s2085_s1 + $0x60] sm:$0xff]   ;;  %v714_v61 = vld [vmem:[%s2086_s4 + $0x30] sm:$0xff] }
  0x15   :  { %1444 = vmatpush3.bf16.msra.mxu0 %v1530_v16  ;;  %v715_v62 = vld [vmem:[%s2086_s4 + $0x38] sm:$0xff]  ;;  %v716_v63 = vld [vmem:[%s2086_s4 + $0x40] sm:$0xff]  ;;  %v717_v0 = vld [vmem:[%s2086_s4 + $0x48] sm:$0xff] }
  0x16   :  { %137 = vperm.xlu0 %1524, %v87_v18   ;;  %1445 = vmatprep.subr.bf16.mxu0 %v1531_v20  ;;  %v1547_v1 = vld [vmem:[%s2085_s1 + $0x68] sm:$0xff]   ;;  %v1548_v2 = vld [vmem:[%s2085_s1 + $0x70] sm:$0xff]   ;;  %v719_v4 = vld [vmem:[%s2086_s4 + $0x58] sm:$0xff] }
  0x17   :  { %142 = vperm.xlu1 %1525, %v88_v19   ;;  %v718_v3 = vld [vmem:[%s2086_s4 + $0x50] sm:$0xff]  ;;  %v720_v5 = vld [vmem:[%s2086_s4 + $0x60] sm:$0xff]  ;;  %v721_v6 = vld [vmem:[%s2086_s4 + $0x68] sm:$0xff] }
  0x18   :  { %v1549_v7 = vld [vmem:[%s2085_s1 + $0x78] sm:$0xff]   ;;  %v722_v8 = vld [vmem:[%s2086_s4 + $0x70] sm:$0xff]  ;;  %v1045_v10 = vld [vmem:[%s2087_s6] sm:$0xff] }
  0x19   :  { %1446 = vmatpush3.bf16.msra.mxu0 %v1531_v20  ;;  %v723_v9 = vld [vmem:[%s2086_s4 + $0x78] sm:$0xff]  ;;  %v1046_v11 = vld [vmem:[%s2087_s6 + $0x8] sm:$0xff]  ;;  %v1047_v12 = vld [vmem:[%s2087_s6 + $0x10] sm:$0xff] }
  0x1a   :  { %227 = vperm.xlu0 %1524, %v105_v21   ;;  %1447 = vmatprep.subr.bf16.mxu0 %v1532_v23  ;;  %v1048_v13 = vld [vmem:[%s2087_s6 + $0x18] sm:$0xff]  ;;  %v1206_v14 = vld [vmem:[%s2088_s7] sm:$0xff]  ;;  %v1207_v15 = vld [vmem:[%s2088_s7 + $0x8] sm:$0xff] }
  0x1b   :  { %232 = vperm.xlu1 %1525, %v106_v22   ;;  %v1049_v16 = vld [vmem:[%s2087_s6 + $0x20] sm:$0xff]  ;;  %v1208_v17 = vld [vmem:[%s2088_s7 + $0x10] sm:$0xff]  ;;  %v1050_v18 = vld [vmem:[%s2087_s6 + $0x28] sm:$0xff] }
  0x1c   :  { %v1209_v19 = vld [vmem:[%s2088_s7 + $0x18] sm:$0xff]  ;;  %v1051_v20 = vld [vmem:[%s2087_s6 + $0x30] sm:$0xff]  ;;  %v1210_v21 = vld [vmem:[%s2088_s7 + $0x20] sm:$0xff] }
  0x1d   :  { %1448 = vmatpush3.bf16.msra.mxu0 %v1532_v23  ;;  %v1052_v22 = vld [vmem:[%s2087_s6 + $0x38] sm:$0xff]  ;;  %v1211_v23 = vld [vmem:[%s2088_s7 + $0x28] sm:$0xff] }
  0x1e   :  { %147 = vperm.xlu0 %1524, %v89_v24   ;;  %1449 = vmatprep.subr.bf16.mxu0 %v1533_v26  ;;  %v1212_v24 = vld [vmem:[%s2088_s7 + $0x30] sm:$0xff] }
  0x1f   :  { %152 = vperm.xlu1 %1525, %v90_v25   ;;  %v1213_v25 = vld [vmem:[%s2088_s7 + $0x38] sm:$0xff] }
  0x21   :  { %1450 = vmatpush3.bf16.msra.mxu0 %v1533_v26  ;;  %v1275_v26 = vld [vmem:[#allocation2] sm:$0x1] }
  0x22   :  { %237 = vperm.xlu0 %1524, %v107_v27  }
  0x23   :  { %242 = vperm.xlu1 %1525, %v108_v28  }
  0x24   :  { %1452 = vmatmul.mubr.bf16.vlgmr.msra.gmra.mrb[0].mxu0 %v1535_v29 }
  0x25   :  { %1455 = vmatprep.mubr.bf16.mxu0 %v1536_v30 }
  0x26   :  { %157 = vperm.xlu0 %1524, %v91_v31  }
  0x27   :  { %162 = vperm.xlu1 %1525, %v92_v32   ;;  %v1552_v32 = vld [vmem:[%s2089_s3 + $0x4] ss:$8 sps:$4 sm:$0xff]  }
  0x28   :  { %916 = vmatprep.mubr.bf16.mxu1 %v1552_v32 }
  0x2a   :  { %247 = vperm.xlu0 %1524, %v109_v33  }
  0x2b   :  { %252 = vperm.xlu1 %1525, %v110_v34  }
  0x2c   :  { %1456 = vmatmul.mubr.bf16.gmra.mrb[4].mxu0 %v1537_v35 }
  0x2d   :  { %1459 = vmatprep.mubr.bf16.mxu0 %v1538_v36 }
  0x2e   :  { %167 = vperm.xlu0 %1524, %v93_v37  }
  0x2f   :  { %172 = vperm.xlu1 %1525, %v94_v38  }
  0x32   :  { %257 = vperm.xlu0 %1524, %v111_v39  }
  0x33   :  { %262 = vperm.xlu1 %1525, %v112_v40  }
  0x34   :  { %1460 = vmatmul.mubr.bf16.gmra.mrb[8].mxu0 %v1539_v41 }
  0x35   :  { %1463 = vmatprep.mubr.bf16.mxu0 %v1540_v42 }
  0x36   :  { %177 = vperm.xlu0 %1524, %v95_v43  }
  0x37   :  { %182 = vperm.xlu1 %1525, %v96_v44  }
  0x3a   :  { %267 = vperm.xlu0 %1524, %v113_v45  }
  0x3b   :  { %272 = vperm.xlu1 %1525, %v114_v46  }
  0x3c   :  { %1464 = vmatmul.mubr.bf16.gmra.mrb[12].mxu0 %v1541_v47 }
  0x3d   :  { %1467 = vmatprep.mubr.bf16.mxu0 %v1542_v48 }
  0x3e   :  { %187 = vperm.xlu0 %1524, %v97_v49  }
  0x3f   :  { %192 = vperm.xlu1 %1525, %v98_v50  }
  0x42   :  { %726 = vperm.xlu0 %1524, %v708_v51  }
  0x43   :  { %731 = vperm.xlu1 %1525, %v709_v52  }
  0x44   :  { %1468 = vmatmul.mubr.bf16.gmra.mrb[16].mxu0 %v1543_v53 }
  0x45   :  { %1471 = vmatprep.mubr.bf16.mxu0 %v1544_v54 }
  0x46   :  { %736 = vperm.xlu0 %1524, %v710_v55  }
  0x47   :  { %741 = vperm.xlu1 %1525, %v711_v56  }
  0x4a   :  { %746 = vperm.xlu0 %1524, %v712_v57  }
  0x4b   :  { %751 = vperm.xlu1 %1525, %v713_v58  }
  0x4c   :  { %1472 = vmatmul.mubr.bf16.gmra.mrb[20].mxu0 %v1545_v59 }
  0x4d   :  { %1475 = vmatprep.mubr.bf16.mxu0 %v1546_v60 }
  0x4e   :  { %756 = vperm.xlu0 %1524, %v714_v61  }
  0x4f   :  { %761 = vperm.xlu1 %1525, %v715_v62  }
  0x52   :  { %766 = vperm.xlu0 %1524, %v716_v63  }
  0x53   :  { %771 = vperm.xlu1 %1525, %v717_v0  }
  0x54   :  { %1476 = vmatmul.mubr.bf16.gmra.mrb[24].mxu0 %v1547_v1 }
  0x55   :  { %1479 = vmatprep.mubr.bf16.mxu0 %v1548_v2 }
  0x56   :  { %776 = vperm.xlu0 %1524, %v718_v3  }
  0x57   :  { %781 = vperm.xlu1 %1525, %v719_v4  }
  0x5a   :  { %786 = vperm.xlu0 %1524, %v720_v5  }
  0x5b   :  { %791 = vperm.xlu1 %1525, %v721_v6  }
  0x5c   :  { %1480 = vmatmul.mubr.bf16.gmra.mrb[28].mxu0 %v1549_v7 }
  0x5e   :  { %796 = vperm.xlu0 %1524, %v722_v8  }
  0x5f   :  { %801 = vperm.xlu1 %1525, %v723_v9  }
  0x62   :  { %1055 = vperm.xlu0 %1524, %v1045_v10  }
  0x63   :  { %1060 = vperm.xlu1 %1525, %v1046_v11  }
  0x66   :  { %1065 = vperm.xlu0 %1524, %v1047_v12  }
  0x67   :  { %1070 = vperm.xlu1 %1525, %v1048_v13  }
  0x6a   :  { %1216 = vperm.xlu0 %1524, %v1206_v14  }
  0x6b   :  { %1221 = vperm.xlu1 %1525, %v1207_v15  }
  0x6e   :  { %1075 = vperm.xlu0 %1524, %v1049_v16  }
  0x6f   :  { %1226 = vperm.xlu1 %1525, %v1208_v17  }
  0x72   :  { %1080 = vperm.xlu0 %1524, %v1050_v18  }
  0x73   :  { %1231 = vperm.xlu1 %1525, %v1209_v19  }
  0x76   :  { %1085 = vperm.xlu0 %1524, %v1051_v20  }
  0x77   :  { %1236 = vperm.xlu1 %1525, %v1210_v21  }
  0x7a   :  { %1090 = vperm.xlu0 %1524, %v1052_v22  }
  0x7b   :  { %1241 = vperm.xlu1 %1525, %v1211_v23  }
  0x7e   :  { %1246 = vperm.xlu0 %1524, %v1212_v24  }
  0x7f   :  { %1251 = vperm.xlu1 %1525, %v1213_v25  }
  0x81   :  { %v1896_v27 = vpop.permute.xlu0 %197 }
  0x82   :  { %1278 = vperm.xlu0 %1524, %v1275_v26   ;;  %v118_v28 = vpop.permute.xlu1 %117 }
  0x85   :  { %v1898_v29 = vpop.permute.xlu0 %202 }
  0x86   :  { %v123_v30 = vpop.permute.xlu1 %122 }
  0x89   :  { %v1900_v31 = vpop.permute.xlu0 %207 }
  0x8a   :  { %v1905_v33 = vpop.permute.xlu1 %212 }
  0x8d   :  { %v128_v34 = vpop.permute.xlu0 %127 }
  0x8e   :  { %v133_v35 = vpop.permute.xlu1 %132 }
  0x91   :  { %v1907_v36 = vpop.permute.xlu0 %217 }
  0x92   :  { %v1909_v37 = vpop.permute.xlu1 %222 }
  0x95   :  { %v138_v38 = vpop.permute.xlu0 %137 }
  0x96   :  { %v143_v39 = vpop.permute.xlu1 %142 }
  0x99   :  { %v1911_v40 = vpop.permute.xlu0 %227 }
  0x9a   :  { %v1913_v41 = vpop.permute.xlu1 %232 }
  0x9d   :  { %v148_v42 = vpop.permute.xlu0 %147 }
  0x9e   :  { %v153_v43 = vpop.permute.xlu1 %152 }
  0xa1   :  { %v1915_v44 = vpop.permute.xlu0 %237 }
  0xa2   :  { %v1917_v45 = vpop.permute.xlu1 %242 }
  0xa5   :  { %v158_v46 = vpop.permute.xlu0 %157 }
  0xa6   :  { %v1919_v47 = vpop.permute.xlu1 %162 }
  0xa9   :  { %v1921_v48 = vpop.permute.xlu0 %247 }
  0xaa   :  { %v1923_v49 = vpop.permute.xlu1 %252 }
  0xad   :  { %v168_v50 = vpop.permute.xlu0 %167 }
  0xae   :  { %v173_v54 = vpop.permute.xlu1 %172 }
  0xb1   :  { %v1925_v62 = vpop.permute.xlu0 %257 }
  0xb2   :  { %v1927_v1 = vpop.permute.xlu1 %262 }
  0xb5   :  { %v178_v16 = vpop.permute.xlu0 %177 }
  0xb6   :  { %v183_v20 = vpop.permute.xlu1 %182 }
  0xf7   :  { %v1453_v51 = vpop.f32.mrb[0].mxu0 }
  0xf8   :  { %v462_v52 = vadd.f32 %v1453_v51, %v128_v34  ;;  %v453_v53 = vpop.f32.mrb[1].mxu0 }
  0xf9   :  { %v454_v55 = vadd.f32 %v453_v53, %v118_v28  ;;  %v1454_v56 = vpop.f32.mrb[2].mxu0 }
  0xfa   :  { %v614_v57 = vmul.f32 0.01, %v462_v52  ;;  %v465_v58 = vadd.f32 %v1454_v56, %v133_v35  ;;  %v456_v59 = vpop.f32.mrb[3].mxu0  ;;  %vm582_vm0 = vcmp.gt.f32.partialorder %v462_v52, 0.0  ;;  %v1953_v35 = vpop.permute.xlu0 %267 }
  0xfb   :  { %v612_v60 = vmul.f32 0.01, %v454_v55  ;;  %v457_v61 = vadd.f32 %v456_v59, %v123_v30  ;;  %vm580_vm2 = vcmp.gt.f32.partialorder %v454_v55, 0.0 }
  0xfc   :  { %vm583_vm1 = vcmp.gt.f32.partialorder %v465_v58, 0.0  ;;  %v615_v63 = vmul.f32 0.01, %v465_v58  ;;  %v1929_v3 = vsel %vm582_vm0, %v462_v52, %v614_v57  ;;  %v1955_v52 = vpop.permute.xlu1 %272 }
  0xfd   :  { %v613_v0 = vmul.f32 0.01, %v457_v61  ;;  %vm581_vm3 = vcmp.gt.f32.partialorder %v457_v61, 0.0  ;;  %v1933_v7 = vsel %vm580_vm2, %v454_v55, %v612_v60 }
  0xfe   :  { %v1931_v4 = vsel %vm583_vm1, %v465_v58, %v615_v63 }
  0xff   :  { %v1457_v2 = vpop.f32.mrb[4].mxu0  ;;  %v1935_v8 = vsel %vm581_vm3, %v457_v61, %v613_v0  ;;  %v693_v9 = vpack.c.bf16 %v1931_v4, %v1929_v3 }
 0x100   :  { %v478_v5 = vadd.f32 %v1457_v2, %v148_v42  ;;  %v469_v6 = vpop.f32.mrb[5].mxu0  ;;  %v692_v12 = vpack.c.bf16 %v1935_v8, %v1933_v7  ;;  %v193_v2 = vpop.permute.xlu1 %192 }
 0x101   :  { %v470_v10 = vadd.f32 %v469_v6, %v138_v38  ;;  %v1458_v11 = vpop.f32.mrb[6].mxu0 }
 0x102   :  { %v618_v13 = vmul.f32 0.01, %v478_v5  ;;  %v481_v14 = vadd.f32 %v1458_v11, %v153_v43  ;;  %v472_v15 = vpop.f32.mrb[7].mxu0  ;;  %vm586_vm4 = vcmp.gt.f32.partialorder %v478_v5, 0.0 }
 0x103   :  { %v616_v17 = vmul.f32 0.01, %v470_v10  ;;  %v473_v18 = vadd.f32 %v472_v15, %v143_v39  ;;  %vm584_vm5 = vcmp.gt.f32.partialorder %v470_v10, 0.0 }
 0x104   :  { %vm587_vm6 = vcmp.gt.f32.partialorder %v481_v14, 0.0  ;;  %v619_v19 = vmul.f32 0.01, %v481_v14  ;;  %v1941_v22 = vsel %vm586_vm4, %v478_v5, %v618_v13 }
 0x105   :  { %vm585_vm7 = vcmp.gt.f32.partialorder %v473_v18, 0.0  ;;  %v617_v21 = vmul.f32 0.01, %v473_v18  ;;  %v1945_v25 = vsel %vm584_vm5, %v470_v10, %v616_v17 }
 0x106   :  { %v1943_v23 = vsel %vm587_vm6, %v481_v14, %v619_v19 }
 0x107   :  { %v1461_v24 = vpop.f32.mrb[8].mxu0  ;;  %v1947_v26 = vsel %vm585_vm7, %v473_v18, %v617_v21  ;;  %v695_v28 = vpack.c.bf16 %v1943_v23, %v1941_v22 }
 0x108   :  { %v494_v30 = vadd.f32 %v1461_v24, %v168_v50  ;;  %v485_v32 = vpop.f32.mrb[9].mxu0  ;;  %v694_v34 = vpack.c.bf16 %v1947_v26, %v1945_v25 }
 0x109   :  { %v486_v38 = vadd.f32 %v485_v32, %v158_v46  ;;  %v1462_v39 = vpop.f32.mrb[10].mxu0  ;;  %v188_v46 = vpop.permute.xlu0 %187 }
 0x10a   :  { %v622_v42 = vmul.f32 0.01, %v494_v30  ;;  %v497_v43 = vadd.f32 %v1462_v39, %v173_v54  ;;  %v488_v51 = vpop.f32.mrb[11].mxu0  ;;  %vm590_vm8 = vcmp.gt.f32.partialorder %v494_v30, 0.0 }
 0x10b   :  { %v620_v53 = vmul.f32 0.01, %v486_v38  ;;  %v489_v55 = vadd.f32 %v488_v51, %v1919_v47  ;;  %vm588_vm9 = vcmp.gt.f32.partialorder %v486_v38, 0.0 }
 0x10c   :  { %vm591_vm10 = vcmp.gt.f32.partialorder %v497_v43, 0.0  ;;  %v623_v50 = vmul.f32 0.01, %v497_v43  ;;  %v1958_v57 = vsel %vm590_vm8, %v494_v30, %v622_v42 }
 0x10d   :  { %vm589_vm11 = vcmp.gt.f32.partialorder %v489_v55, 0.0  ;;  %v621_v56 = vmul.f32 0.01, %v489_v55  ;;  %v1962_v60 = vsel %vm588_vm9, %v486_v38, %v620_v53 }
 0x10e   :  { %v1960_v58 = vsel %vm591_vm10, %v497_v43, %v623_v50 }
 0x10f   :  { %v1465_v59 = vpop.f32.mrb[12].mxu0  ;;  %v1964_v54 = vsel %vm589_vm11, %v489_v55, %v621_v56  ;;  %v697_v61 = vpack.c.bf16 %v1960_v58, %v1958_v57  ;;  %v1553_v57 = vld [vmem:[%s2089_s3 + $0x14] ss:$8 sps:$4 sm:$0xff]   ;;  %v1555_v58 = vld [vmem:[%s2089_s3 + $0x10] ss:$8 sps:$4 sm:$0xff]  }
 0x110   :  { %v510_v63 = vadd.f32 %v1465_v59, %v188_v46  ;;  %v501_v47 = vpop.f32.mrb[13].mxu0  ;;  %v696_v0 = vpack.c.bf16 %v1964_v54, %v1962_v60  ;;  %v1550_v60 = vld [vmem:[%s2089_s3] ss:$8 sps:$4 sm:$0xff]   ;;  %v1556_v54 = vld [vmem:[%s2089_s3 + $0x24] ss:$8 sps:$4 sm:$0xff]  }
 0x111   :  { %v502_v5 = vadd.f32 %v501_v47, %v178_v16  ;;  %v1466_v6 = vpop.f32.mrb[14].mxu0 }
 0x112   :  { %v626_v10 = vmul.f32 0.01, %v510_v63  ;;  %v513_v11 = vadd.f32 %v1466_v6, %v193_v2  ;;  %v504_v13 = vpop.f32.mrb[15].mxu0  ;;  %vm594_vm12 = vcmp.gt.f32.partialorder %v510_v63, 0.0 }
 0x113   :  { %v624_v14 = vmul.f32 0.01, %v502_v5  ;;  %v505_v15 = vadd.f32 %v504_v13, %v183_v20  ;;  %vm592_vm13 = vcmp.gt.f32.partialorder %v502_v5, 0.0 }
 0x114   :  { %vm595_vm14 = vcmp.gt.f32.partialorder %v513_v11, 0.0  ;;  %v627_v17 = vmul.f32 0.01, %v513_v11  ;;  %v1970_v19 = vsel %vm594_vm12, %v510_v63, %v626_v10 }
 0x115   :  { %vm593_vm15 = vcmp.gt.f32.partialorder %v505_v15, 0.0  ;;  %v625_v18 = vmul.f32 0.01, %v505_v15  ;;  %v1974_v30 = vsel %vm592_vm13, %v502_v5, %v624_v14 }
 0x116   :  { %v1972_v21 = vsel %vm595_vm14, %v513_v11, %v627_v17 }
 0x117   :  { %v1469_v24 = vpop.f32.mrb[16].mxu0  ;;  %v1976_v16 = vsel %vm593_vm15, %v505_v15, %v625_v18  ;;  %v699_v32 = vpack.c.bf16 %v1972_v21, %v1970_v19  ;;  %v1561_v19 = vld [vmem:[%s2089_s3 + $0x30] ss:$8 sps:$4 sm:$0xff]   ;;  %v1562_v21 = vld [vmem:[%s2089_s3 + $0x44] ss:$8 sps:$4 sm:$0xff]  }
 0x118   :  { %v526_v38 = vadd.f32 %v1469_v24, %v1900_v31  ;;  %v517_v20 = vpop.f32.mrb[17].mxu0  ;;  %v698_v39 = vpack.c.bf16 %v1976_v16, %v1974_v30  ;;  %v1564_v30 = vld [vmem:[%s2089_s3 + $0x40] ss:$8 sps:$4 sm:$0xff]   ;;  %v1565_v16 = vld [vmem:[%s2089_s3 + $0x54] ss:$8 sps:$4 sm:$0xff]  }
 0x119   :  { %v518_v42 = vadd.f32 %v517_v20, %v1896_v27  ;;  %v1470_v43 = vpop.f32.mrb[18].mxu0 }
 0x11a   :  { %v630_v51 = vmul.f32 0.01, %v526_v38  ;;  %v529_v53 = vadd.f32 %v1470_v43, %v1905_v33  ;;  %v520_v55 = vpop.f32.mrb[19].mxu0  ;;  %vm598_vm0 = vcmp.gt.f32.partialorder %v526_v38, 0.0 }
 0x11b   :  { %v628_v50 = vmul.f32 0.01, %v518_v42  ;;  %v521_v56 = vadd.f32 %v520_v55, %v1898_v29  ;;  %vm596_vm2 = vcmp.gt.f32.partialorder %v518_v42, 0.0 }
 0x11c   :  { %vm599_vm1 = vcmp.gt.f32.partialorder %v529_v53, 0.0  ;;  %v631_v46 = vmul.f32 0.01, %v529_v53  ;;  %v662_v31 = vsel %vm598_vm0, %v526_v38, %v630_v51 }
 0x11d   :  { %v629_v59 = vmul.f32 0.01, %v521_v56  ;;  %vm597_vm3 = vcmp.gt.f32.partialorder %v521_v56, 0.0  ;;  %v660_v2 = vsel %vm596_vm2, %v518_v42, %v628_v50 }
 0x11e   :  { %v663_v63 = vsel %vm599_vm1, %v529_v53, %v631_v46 }
 0x11f   :  { %v1473_v47 = vpop.f32.mrb[20].mxu0  ;;  %v661_v5 = vsel %vm597_vm3, %v521_v56, %v629_v59  ;;  %v701_v27 = vpack.c.bf16 %v663_v63, %v662_v31 }
 0x120   :  { %v542_v6 = vadd.f32 %v1473_v47, %v1911_v40  ;;  %v533_v10 = vpop.f32.mrb[21].mxu0  ;;  %v700_v33 = vpack.c.bf16 %v661_v5, %v660_v2 }
 0x121   :  { %v534_v11 = vadd.f32 %v533_v10, %v1907_v36  ;;  %v1474_v13 = vpop.f32.mrb[22].mxu0 }
 0x122   :  { %v634_v14 = vmul.f32 0.01, %v542_v6  ;;  %v545_v29 = vadd.f32 %v1474_v13, %v1913_v41  ;;  %v536_v15 = vpop.f32.mrb[23].mxu0  ;;  %1359 = vmatprep.subr.bf16.mxu1 %v700_v33  ;;  %vm602_vm4 = vcmp.gt.f32.partialorder %v542_v6, 0.0  ;;  %v1570_v33 = vld [vmem:[%s2089_s3 + $0x60] ss:$8 sps:$4 sm:$0xff]  }
 0x123   :  { %v632_v17 = vmul.f32 0.01, %v534_v11  ;;  %v537_v18 = vadd.f32 %v536_v15, %v1909_v37  ;;  %1360 = vmatpush3.bf16.msra.mxu1 %v692_v12  ;;  %vm600_vm5 = vcmp.gt.f32.partialorder %v534_v11, 0.0  ;;  %v1573_v13 = vld [vmem:[%s2089_s3 + $0x70] ss:$8 sps:$4 sm:$0xff]  }
 0x124   :  { %vm603_vm6 = vcmp.gt.f32.partialorder %v545_v29, 0.0  ;;  %v635_v40 = vmul.f32 0.01, %v545_v29  ;;  %1361 = vmatprep.subr.bf16.mxu1 %v701_v27  ;;  %v666_v24 = vsel %vm602_vm4, %v542_v6, %v634_v14  ;;  %v1574_v14 = vld [vmem:[%s2090_s5] sm:$0xff]  }
 0x125   :  { %vm601_vm7 = vcmp.gt.f32.partialorder %v537_v18, 0.0  ;;  %v633_v36 = vmul.f32 0.01, %v537_v18  ;;  %v664_v41 = vsel %vm600_vm5, %v534_v11, %v632_v17  ;;  %v1571_v11 = vld [vmem:[%s2089_s3 + $0x74] ss:$8 sps:$4 sm:$0xff]   ;;  %1499 = vmatprep.mubr.bf16.mxu0 %v1574_v14 }
 0x126   :  { %v667_v38 = vsel %vm603_vm6, %v545_v29, %v635_v40  ;;  %v1575_v29 = vld [vmem:[%s2090_s5 + $0x10] sm:$0xff]  }
 0x127   :  { %v1477_v20 = vpop.f32.mrb[24].mxu0  ;;  %1362 = vmatpush3.bf16.msra.mxu1 %v693_v9  ;;  %v665_v42 = vsel %vm601_vm7, %v537_v18, %v633_v36  ;;  %v703_v37 = vpack.c.bf16 %v667_v38, %v666_v24  ;;  %v727_v36 = vpop.permute.xlu0 %726 }
 0x128   :  { %v558_v43 = vadd.f32 %v1477_v20, %v1921_v48  ;;  %v549_v7 = vpop.f32.mrb[25].mxu0  ;;  %v702_v8 = vpack.c.bf16 %v665_v42, %v664_v41  ;;  %v732_v41 = vpop.permute.xlu1 %731 }
 0x129   :  { %v550_v12 = vadd.f32 %v549_v7, %v1915_v44  ;;  %v1478_v51 = vpop.f32.mrb[26].mxu0 }
 0x12a   :  { %v638_v53 = vmul.f32 0.01, %v558_v43  ;;  %v561_v55 = vadd.f32 %v1478_v51, %v1923_v49  ;;  %v552_v50 = vpop.f32.mrb[27].mxu0  ;;  %1363 = vmatprep.subr.bf16.mxu1 %v702_v8  ;;  %vm606_vm8 = vcmp.gt.f32.partialorder %v558_v43, 0.0 }
 0x12b   :  { %v636_v56 = vmul.f32 0.01, %v550_v12  ;;  %v553_v3 = vadd.f32 %v552_v50, %v1917_v45  ;;  %1364 = vmatpush3.bf16.msra.mxu1 %v694_v34  ;;  %vm604_vm9 = vcmp.gt.f32.partialorder %v550_v12, 0.0  ;;  %v737_v50 = vpop.permute.xlu0 %736 }
 0x12c   :  { %vm607_vm10 = vcmp.gt.f32.partialorder %v561_v55, 0.0  ;;  %v639_v48 = vmul.f32 0.01, %v561_v55  ;;  %1365 = vmatprep.subr.bf16.mxu1 %v703_v37  ;;  %v670_v4 = vsel %vm606_vm8, %v558_v43, %v638_v53 }
 0x12d   :  { %vm605_vm11 = vcmp.gt.f32.partialorder %v553_v3, 0.0  ;;  %v637_v44 = vmul.f32 0.01, %v553_v3  ;;  %v668_v49 = vsel %vm604_vm9, %v550_v12, %v636_v56 }
 0x12e   :  { %v671_v9 = vsel %vm607_vm10, %v561_v55, %v639_v48 }
 0x12f   :  { %v1481_v46 = vpop.f32.mrb[28].mxu0  ;;  %1366 = vmatpush3.bf16.msra.mxu1 %v695_v28  ;;  %v669_v59 = vsel %vm605_vm11, %v553_v3, %v637_v44  ;;  %v705_v45 = vpack.c.bf16 %v671_v9, %v670_v4  ;;  %v742_v4 = vpop.permute.xlu1 %741 }
 0x130   :  { %v574_v31 = vadd.f32 %v1481_v46, %v1953_v35  ;;  %v565_v25 = vpop.f32.mrb[29].mxu0  ;;  %v704_v26 = vpack.c.bf16 %v669_v59, %v668_v49 }
 0x131   :  { %v566_v34 = vadd.f32 %v565_v25, %v1925_v62  ;;  %v1482_v63 = vpop.f32.mrb[30].mxu0 }
 0x132   :  { %v642_v47 = vmul.f32 0.01, %v574_v31  ;;  %v577_v2 = vadd.f32 %v1482_v63, %v1955_v52  ;;  %v568_v5 = vpop.f32.mrb[31].mxu0  ;;  %1367 = vmatprep.subr.bf16.mxu1 %v704_v26  ;;  %vm610_vm12 = vcmp.gt.f32.partialorder %v574_v31, 0.0  ;;  %v747_v63 = vpop.permute.xlu0 %746 }
 0x133   :  { %v640_v27 = vmul.f32 0.01, %v566_v34  ;;  %v569_v22 = vadd.f32 %v568_v5, %v1927_v1  ;;  %1368 = vmatpush3.bf16.msra.mxu1 %v696_v0  ;;  %vm608_vm13 = vcmp.gt.f32.partialorder %v566_v34, 0.0  ;;  %v1559_v0 = vld [vmem:[%s2089_s3 + $0x34] ss:$8 sps:$4 sm:$0xff]  }
 0x134   :  { %vm611_vm14 = vcmp.gt.f32.partialorder %v577_v2, 0.0  ;;  %v643_v23 = vmul.f32 0.01, %v577_v2  ;;  %1369 = vmatprep.subr.bf16.mxu1 %v705_v45  ;;  %v674_v28 = vsel %vm610_vm12, %v574_v31, %v642_v47 }
 0x135   :  { %vm609_vm15 = vcmp.gt.f32.partialorder %v569_v22, 0.0  ;;  %v641_v62 = vmul.f32 0.01, %v569_v22  ;;  %v672_v52 = vsel %vm608_vm13, %v566_v34, %v640_v27 }
 0x136   :  { %v675_v35 = vsel %vm611_vm14, %v577_v2, %v643_v23 }
 0x137   :  { %1370 = vmatpush3.bf16.msra.mxu1 %v697_v61  ;;  %v673_v6 = vsel %vm609_vm15, %v569_v22, %v641_v62  ;;  %v707_v10 = vpack.c.bf16 %v675_v35, %v674_v28  ;;  %v1558_v61 = vld [vmem:[%s2089_s3 + $0x20] ss:$8 sps:$4 sm:$0xff]   ;;  %v752_v22 = vpop.permute.xlu1 %751 }
 0x138   :  { %v706_v1 = vpack.c.bf16 %v673_v6, %v672_v52 }
 0x13a   :  { %1371 = vmatprep.subr.bf16.mxu1 %v706_v1 }
 0x13b   :  { %1372 = vmatpush3.bf16.msra.mxu1 %v698_v39  ;;  %v1568_v39 = vld [vmem:[%s2089_s3 + $0x64] ss:$8 sps:$4 sm:$0xff]  }
 0x13c   :  { %1373 = vmatprep.subr.bf16.mxu1 %v707_v10 }
 0x13f   :  { %1374 = vmatpush3.bf16.msra.mxu1 %v699_v32  ;;  %v1567_v32 = vld [vmem:[%s2089_s3 + $0x50] ss:$8 sps:$4 sm:$0xff]  }
 0x142   :  { %917 = vmatmul.mubr.bf16.vlgmr.msra.gmra.mrb[0].mxu1 %v1550_v60 }
 0x143   :  { %924 = vmatprep.mubr.bf16.mxu1 %v1553_v57  ;;  %v757_v57 = vpop.permute.xlu0 %756 }
 0x14a   :  { %925 = vmatmul.mubr.bf16.gmra.mrb[4].mxu1 %v1555_v58 }
 0x14b   :  { %932 = vmatprep.mubr.bf16.mxu1 %v1556_v54 }
 0x152   :  { %933 = vmatmul.mubr.bf16.gmra.mrb[8].mxu1 %v1558_v61 }
 0x153   :  { %940 = vmatprep.mubr.bf16.mxu1 %v1559_v0 }
 0x15a   :  { %941 = vmatmul.mubr.bf16.gmra.mrb[12].mxu1 %v1561_v19  ;;  %v762_v19 = vpop.permute.xlu1 %761 }
 0x15b   :  { %948 = vmatprep.mubr.bf16.mxu1 %v1562_v21 }
 0x162   :  { %949 = vmatmul.mubr.bf16.gmra.mrb[16].mxu1 %v1564_v30 }
 0x163   :  { %956 = vmatprep.mubr.bf16.mxu1 %v1565_v16 }
 0x16a   :  { %957 = vmatmul.mubr.bf16.gmra.mrb[20].mxu1 %v1567_v32 }
 0x16b   :  { %964 = vmatprep.mubr.bf16.mxu1 %v1568_v39 }
 0x172   :  { %965 = vmatmul.mubr.bf16.gmra.mrb[24].mxu1 %v1570_v33 }
 0x173   :  { %972 = vmatprep.mubr.bf16.mxu1 %v1571_v11 }
 0x17a   :  { %973 = vmatmul.mubr.bf16.gmra.mrb[28].mxu1 %v1573_v13 }
 0x17b   :  { %1503 = vmatprep.mubr.bf16.mxu1 %v1575_v29  ;;  %v767_v29 = vpop.permute.xlu0 %766 }
 0x215   :  { %v1375_v15 = vpop.f32.mrb[0].mxu1 }
 0x216   :  { %v1376_v17 = vpop.f32.mrb[1].mxu1 }
 0x217   :  { %v1377_v18 = vadd.f32 %v1376_v17, %v1375_v15  ;;  %v1378_v40 = vpop.f32.mrb[2].mxu1 }
 0x218   :  { %v1379_v24 = vpop.f32.mrb[3].mxu1 }
 0x219   :  { %v919_v38 = vadd.f32 %v1377_v18, %v727_v36  ;;  %v1380_v20 = vadd.f32 %v1379_v24, %v1378_v40  ;;  %v772_v36 = vpop.permute.xlu1 %771 }
 0x21b   :  { %v997_v42 = vmul.f32 0.01, %v919_v38  ;;  %v922_v37 = vadd.f32 %v1380_v20, %v732_v41  ;;  %vm981_vm0 = vcmp.gt.f32.partialorder %v919_v38, 0.0 }
 0x21d   :  { %vm982_vm1 = vcmp.gt.f32.partialorder %v922_v37, 0.0  ;;  %v998_v43 = vmul.f32 0.01, %v922_v37  ;;  %v1381_v7 = vpop.f32.mrb[4].mxu1  ;;  %v1013_v12 = vsel %vm981_vm0, %v919_v38, %v997_v42 }
 0x21e   :  { %v1382_v8 = vpop.f32.mrb[5].mxu1 }
 0x21f   :  { %v1014_v51 = vsel %vm982_vm1, %v922_v37, %v998_v43  ;;  %v1383_v53 = vadd.f32 %v1382_v8, %v1381_v7  ;;  %v1384_v55 = vpop.f32.mrb[6].mxu1 }
 0x220   :  { %v1385_v56 = vpop.f32.mrb[7].mxu1  ;;  %v1037_v3 = vpack.c.bf16 %v1014_v51, %v1013_v12  ;;  %v777_v12 = vpop.permute.xlu0 %776 }
 0x221   :  { %v927_v48 = vadd.f32 %v1383_v53, %v737_v50  ;;  %v1386_v44 = vadd.f32 %v1385_v56, %v1384_v55  ;;  %v782_v56 = vpop.permute.xlu1 %781 }
 0x222   :  { %1483 = vmatprep.subr.bf16.mxu0 %v1037_v3  ;;  %1507 = vmatprep.subr.bf16.mxu1 %v1037_v3 }
 0x223   :  { %v999_v9 = vmul.f32 0.01, %v927_v48  ;;  %v930_v46 = vadd.f32 %v1386_v44, %v742_v4  ;;  %1484 = vmatpush3.bf16.msra.mxu0 %v1037_v3  ;;  %1515 = vmatpush3.bf16.msra.mxu1 %v1037_v3  ;;  %vm983_vm2 = vcmp.gt.f32.partialorder %v927_v48, 0.0 }
 0x225   :  { %vm984_vm3 = vcmp.gt.f32.partialorder %v930_v46, 0.0  ;;  %v1000_v49 = vmul.f32 0.01, %v930_v46  ;;  %v1387_v59 = vpop.f32.mrb[8].mxu1  ;;  %v1015_v31 = vsel %vm983_vm2, %v927_v48, %v999_v9 }
 0x226   :  { %v1388_v45 = vpop.f32.mrb[9].mxu1 }
 0x227   :  { %v1016_v25 = vsel %vm984_vm3, %v930_v46, %v1000_v49  ;;  %v1389_v26 = vadd.f32 %v1388_v45, %v1387_v59  ;;  %v1390_v34 = vpop.f32.mrb[10].mxu1 }
 0x228   :  { %v1391_v47 = vpop.f32.mrb[11].mxu1  ;;  %v1038_v2 = vpack.c.bf16 %v1016_v25, %v1015_v31  ;;  %v787_v31 = vpop.permute.xlu0 %786 }
 0x229   :  { %v935_v5 = vadd.f32 %v1389_v26, %v747_v63  ;;  %v1392_v27 = vadd.f32 %v1391_v47, %v1390_v34  ;;  %v792_v47 = vpop.permute.xlu1 %791 }
 0x22a   :  { %1485 = vmatprep.subr.bf16.mxu0 %v1038_v2  ;;  %1508 = vmatprep.subr.bf16.mxu1 %v1038_v2 }
 0x22b   :  { %v1001_v23 = vmul.f32 0.01, %v935_v5  ;;  %v938_v62 = vadd.f32 %v1392_v27, %v752_v22  ;;  %1486 = vmatpush3.bf16.msra.mxu0 %v1038_v2  ;;  %1516 = vmatpush3.bf16.msra.mxu1 %v1038_v2  ;;  %vm985_vm4 = vcmp.gt.f32.partialorder %v935_v5, 0.0 }
 0x22d   :  { %vm986_vm5 = vcmp.gt.f32.partialorder %v938_v62, 0.0  ;;  %v1002_v28 = vmul.f32 0.01, %v938_v62  ;;  %v1393_v35 = vpop.f32.mrb[12].mxu1  ;;  %v1017_v6 = vsel %vm985_vm4, %v935_v5, %v1001_v23 }
 0x22e   :  { %v1394_v52 = vpop.f32.mrb[13].mxu1 }
 0x22f   :  { %v1018_v10 = vsel %vm986_vm5, %v938_v62, %v1002_v28  ;;  %v1395_v1 = vadd.f32 %v1394_v52, %v1393_v35  ;;  %v1396_v60 = vpop.f32.mrb[14].mxu1 }
 0x230   :  { %v1397_v58 = vpop.f32.mrb[15].mxu1  ;;  %v1039_v54 = vpack.c.bf16 %v1018_v10, %v1017_v6  ;;  %v797_v6 = vpop.permute.xlu0 %796 }
 0x231   :  { %v943_v61 = vadd.f32 %v1395_v1, %v757_v57  ;;  %v1398_v0 = vadd.f32 %v1397_v58, %v1396_v60  ;;  %v802_v58 = vpop.permute.xlu1 %801 }
 0x232   :  { %1487 = vmatprep.subr.bf16.mxu0 %v1039_v54  ;;  %1509 = vmatprep.subr.bf16.mxu1 %v1039_v54 }
 0x233   :  { %v1003_v21 = vmul.f32 0.01, %v943_v61  ;;  %v946_v30 = vadd.f32 %v1398_v0, %v762_v19  ;;  %1488 = vmatpush3.bf16.msra.mxu0 %v1039_v54  ;;  %1517 = vmatpush3.bf16.msra.mxu1 %v1039_v54  ;;  %vm987_vm6 = vcmp.gt.f32.partialorder %v943_v61, 0.0 }
 0x235   :  { %vm988_vm7 = vcmp.gt.f32.partialorder %v946_v30, 0.0  ;;  %v1004_v16 = vmul.f32 0.01, %v946_v30  ;;  %v1399_v32 = vpop.f32.mrb[16].mxu1  ;;  %v1019_v33 = vsel %vm987_vm6, %v943_v61, %v1003_v21 }
 0x236   :  { %v1400_v39 = vpop.f32.mrb[17].mxu1 }
 0x237   :  { %v1020_v11 = vsel %vm988_vm7, %v946_v30, %v1004_v16  ;;  %v1401_v13 = vadd.f32 %v1400_v39, %v1399_v32  ;;  %v1402_v14 = vpop.f32.mrb[18].mxu1  ;;  %v1576_v16 = vld [vmem:[%s2090_s5 + $0x8] sm:$0xff]   ;;  %v1577_v32 = vld [vmem:[%s2090_s5 + $0x18] sm:$0xff]   ;;  %v1056_v39 = vpop.permute.xlu0 %1055 }
 0x238   :  { %v1403_v15 = vpop.f32.mrb[19].mxu1  ;;  %v1040_v17 = vpack.c.bf16 %v1020_v11, %v1019_v33  ;;  %v1061_v33 = vpop.permute.xlu1 %1060 }
 0x239   :  { %v951_v18 = vadd.f32 %v1401_v13, %v767_v29  ;;  %v1404_v40 = vadd.f32 %v1403_v15, %v1402_v14 }
 0x23a   :  { %1489 = vmatprep.subr.bf16.mxu0 %v1040_v17  ;;  %1510 = vmatprep.subr.bf16.mxu1 %v1040_v17 }
 0x23b   :  { %v1005_v24 = vmul.f32 0.01, %v951_v18  ;;  %v954_v38 = vadd.f32 %v1404_v40, %v772_v36  ;;  %1490 = vmatpush3.bf16.msra.mxu0 %v1040_v17  ;;  %1518 = vmatpush3.bf16.msra.mxu1 %v1040_v17  ;;  %vm989_vm8 = vcmp.gt.f32.partialorder %v951_v18, 0.0  ;;  %v1066_v11 = vpop.permute.xlu0 %1065 }
 0x23c   :  { %v1071_v13 = vpop.permute.xlu1 %1070 }
 0x23d   :  { %vm990_vm9 = vcmp.gt.f32.partialorder %v954_v38, 0.0  ;;  %v1006_v20 = vmul.f32 0.01, %v954_v38  ;;  %v1405_v41 = vpop.f32.mrb[20].mxu1  ;;  %v1021_v37 = vsel %vm989_vm8, %v951_v18, %v1005_v24 }
 0x23e   :  { %v1406_v42 = vpop.f32.mrb[21].mxu1 }
 0x23f   :  { %v1022_v43 = vsel %vm990_vm9, %v954_v38, %v1006_v20  ;;  %v1407_v7 = vadd.f32 %v1406_v42, %v1405_v41  ;;  %v1408_v8 = vpop.f32.mrb[22].mxu1  ;;  %v1217_v14 = vpop.permute.xlu0 %1216 }
 0x240   :  { %v1409_v51 = vpop.f32.mrb[23].mxu1  ;;  %v1041_v53 = vpack.c.bf16 %v1022_v43, %v1021_v37  ;;  %v1222_v29 = vpop.permute.xlu1 %1221 }
 0x241   :  { %v959_v55 = vadd.f32 %v1407_v7, %v777_v12  ;;  %v1410_v50 = vadd.f32 %v1409_v51, %v1408_v8 }
 0x242   :  { %1491 = vmatprep.subr.bf16.mxu0 %v1041_v53  ;;  %1511 = vmatprep.subr.bf16.mxu1 %v1041_v53 }
 0x243   :  { %v1007_v3 = vmul.f32 0.01, %v959_v55  ;;  %v962_v48 = vadd.f32 %v1410_v50, %v782_v56  ;;  %1492 = vmatpush3.bf16.msra.mxu0 %v1041_v53  ;;  %1519 = vmatpush3.bf16.msra.mxu1 %v1041_v53  ;;  %vm991_vm10 = vcmp.gt.f32.partialorder %v959_v55, 0.0  ;;  %v1076_v15 = vpop.permute.xlu0 %1075 }
 0x244   :  { %v1227_v17 = vpop.permute.xlu1 %1226 }
 0x245   :  { %vm992_vm11 = vcmp.gt.f32.partialorder %v962_v48, 0.0  ;;  %v1008_v44 = vmul.f32 0.01, %v962_v48  ;;  %v1411_v4 = vpop.f32.mrb[24].mxu1  ;;  %v1023_v46 = vsel %vm991_vm10, %v959_v55, %v1007_v3 }
 0x246   :  { %v1412_v9 = vpop.f32.mrb[25].mxu1 }
 0x247   :  { %v1024_v49 = vsel %vm992_vm11, %v962_v48, %v1008_v44  ;;  %v1413_v59 = vadd.f32 %v1412_v9, %v1411_v4  ;;  %v1414_v45 = vpop.f32.mrb[26].mxu1  ;;  %v1081_v18 = vpop.permute.xlu0 %1080 }
 0x248   :  { %v1415_v25 = vpop.f32.mrb[27].mxu1  ;;  %v1042_v26 = vpack.c.bf16 %v1024_v49, %v1023_v46  ;;  %v1232_v12 = vpop.permute.xlu1 %1231 }
 0x249   :  { %v967_v34 = vadd.f32 %v1413_v59, %v787_v31  ;;  %v1416_v63 = vadd.f32 %v1415_v25, %v1414_v45 }
 0x24a   :  { %1493 = vmatprep.subr.bf16.mxu0 %v1042_v26  ;;  %1512 = vmatprep.subr.bf16.mxu1 %v1042_v26 }
 0x24b   :  { %v1009_v2 = vmul.f32 0.01, %v967_v34  ;;  %v970_v5 = vadd.f32 %v1416_v63, %v792_v47  ;;  %1494 = vmatpush3.bf16.msra.mxu0 %v1042_v26  ;;  %1520 = vmatpush3.bf16.msra.mxu1 %v1042_v26  ;;  %vm993_vm12 = vcmp.gt.f32.partialorder %v967_v34, 0.0  ;;  %v1086_v53 = vpop.permute.xlu0 %1085 }
 0x24c   :  { %v1237_v9 = vpop.permute.xlu1 %1236 }
 0x24d   :  { %vm994_vm13 = vcmp.gt.f32.partialorder %v970_v5, 0.0  ;;  %v1010_v27 = vmul.f32 0.01, %v970_v5  ;;  %v1417_v22 = vpop.f32.mrb[28].mxu1  ;;  %v1025_v62 = vsel %vm993_vm12, %v967_v34, %v1009_v2 }
 0x24e   :  { %v1418_v23 = vpop.f32.mrb[29].mxu1 }
 0x24f   :  { %v1026_v28 = vsel %vm994_vm13, %v970_v5, %v1010_v27  ;;  %v1419_v35 = vadd.f32 %v1418_v23, %v1417_v22  ;;  %v1420_v52 = vpop.f32.mrb[30].mxu1  ;;  %v1091_v31 = vpop.permute.xlu0 %1090 }
 0x250   :  { %v1421_v10 = vpop.f32.mrb[31].mxu1  ;;  %v1043_v1 = vpack.c.bf16 %v1026_v28, %v1025_v62  ;;  %v1242_v28 = vpop.permute.xlu1 %1241 }
 0x251   :  { %v975_v60 = vadd.f32 %v1419_v35, %v797_v6  ;;  %v1422_v57 = vadd.f32 %v1421_v10, %v1420_v52 }
 0x252   :  { %1495 = vmatprep.subr.bf16.mxu0 %v1043_v1  ;;  %1513 = vmatprep.subr.bf16.mxu1 %v1043_v1 }
 0x253   :  { %v1011_v54 = vmul.f32 0.01, %v975_v60  ;;  %v978_v61 = vadd.f32 %v1422_v57, %v802_v58  ;;  %1496 = vmatpush3.bf16.msra.mxu0 %v1043_v1  ;;  %1521 = vmatpush3.bf16.msra.mxu1 %v1043_v1  ;;  %vm995_vm14 = vcmp.gt.f32.partialorder %v975_v60, 0.0  ;;  %v1247_v58 = vpop.permute.xlu0 %1246 }
 0x255   :  { %vm996_vm15 = vcmp.gt.f32.partialorder %v978_v61, 0.0  ;;  %v1012_v0 = vmul.f32 0.01, %v978_v61  ;;  %v1027_v19 = vsel %vm995_vm14, %v975_v60, %v1011_v54 }
 0x257   :  { %v1028_v21 = vsel %vm996_vm15, %v978_v61, %v1012_v0 }
 0x258   :  { %v1044_v30 = vpack.c.bf16 %v1028_v21, %v1027_v19  ;;  %v1252_v19 = vpop.permute.xlu1 %1251 }
 0x25a   :  { %1497 = vmatprep.subr.bf16.mxu0 %v1044_v30  ;;  %1514 = vmatprep.subr.bf16.mxu1 %v1044_v30 }
 0x25b   :  { %1498 = vmatpush3.bf16.msra.mxu0 %v1044_v30  ;;  %1522 = vmatpush3.bf16.msra.mxu1 %v1044_v30 }
 0x25e   :  { %1500 = vmatmul.mubr.bf16.vlgmr.msra.gmra.mrb[32].mxu0 %v1576_v16  ;;  %1504 = vmatmul.mubr.bf16.vlgmr.msra.gmra.mrb[32].mxu1 %v1577_v32  ;;  %v1281_v16 = vlaneseq }
 0x331   :  { %v1501_v40 = vpop.f32.mrb[32].mxu0  ;;  %v1505_v36 = vpop.f32.mrb[32].mxu1 }
 0x332   :  { %v1151_v24 = vpop.f32.mrb[33].mxu0  ;;  %v1167_v38 = vpop.f32.mrb[33].mxu1  ;;  %v1160_v37 = vadd.f32 %v1501_v40, %v1066_v11  ;;  %v1176_v49 = vadd.f32 %v1505_v36, %v1086_v53 }
 0x333   :  { %v1152_v20 = vadd.f32 %v1151_v24, %v1056_v39  ;;  %v1502_v41 = vpop.f32.mrb[34].mxu0  ;;  %v1506_v42 = vpop.f32.mrb[34].mxu1  ;;  %v1168_v50 = vadd.f32 %v1167_v38, %v1076_v15 }
 0x334   :  { %v1154_v7 = vpop.f32.mrb[35].mxu0  ;;  %v1170_v8 = vpop.f32.mrb[35].mxu1  ;;  %v1163_v51 = vadd.f32 %v1502_v41, %v1071_v13  ;;  %v1192_v55 = vmul.f32 0.01, %v1160_v37  ;;  %vm1184_vm1 = vcmp.gt.f32.partialorder %v1160_v37, 0.0  ;;  %v1179_v63 = vadd.f32 %v1506_v42, %v1091_v31 }
 0x335   :  { %v1190_v43 = vmul.f32 0.01, %v1152_v20  ;;  %vm1182_vm0 = vcmp.gt.f32.partialorder %v1152_v20, 0.0  ;;  %v1155_v56 = vadd.f32 %v1154_v7, %v1061_v33  ;;  %v1171_v4 = vadd.f32 %v1170_v8, %v1081_v18  ;;  %v1279_v15 = vpop.permute.xlu0 %1278 }
 0x336   :  { %v1193_v48 = vmul.f32 0.01, %v1163_v51  ;;  %vm1185_vm3 = vcmp.gt.f32.partialorder %v1163_v51, 0.0  ;;  %v1200_v46 = vsel %vm1184_vm1, %v1160_v37, %v1192_v55  ;;  %v1194_v59 = vmul.f32 0.01, %v1168_v50 }
 0x337   :  { %v1198_v3 = vsel %vm1182_vm0, %v1152_v20, %v1190_v43  ;;  %vm1183_vm2 = vcmp.gt.f32.partialorder %v1155_v56, 0.0  ;;  %v1191_v44 = vmul.f32 0.01, %v1155_v56  ;;  %vm1186_vm4 = vcmp.gt.f32.partialorder %v1168_v50, 0.0 }
 0x338   :  { %v1254_v25 = vmul.f32 %v1217_v14, %v1198_v3  ;;  %v1201_v34 = vsel %vm1185_vm3, %v1163_v51, %v1193_v48  ;;  %v1195_v47 = vmul.f32 0.01, %v1171_v4  ;;  %v1256_v2 = vmul.f32 %v1227_v17, %v1200_v46 }
 0x339   :  { %v1199_v45 = vsel %vm1183_vm2, %v1155_v56, %v1191_v44  ;;  %vm1187_vm5 = vcmp.gt.f32.partialorder %v1171_v4, 0.0  ;;  %v1196_v27 = vmul.f32 0.01, %v1176_v49  ;;  %v1202_v22 = vsel %vm1186_vm4, %v1168_v50, %v1194_v59 }
 0x33a   :  { %v1255_v26 = vmul.f32 %v1222_v29, %v1199_v45  ;;  %vm1188_vm6 = vcmp.gt.f32.partialorder %v1176_v49, 0.0  ;;  %v1257_v23 = vmul.f32 %v1232_v12, %v1201_v34  ;;  %v1197_v35 = vmul.f32 0.01, %v1179_v63 }
 0x33b   :  { %v1203_v52 = vsel %vm1187_vm5, %v1171_v4, %v1195_v47  ;;  %v1258_v6 = vmul.f32 %v1237_v9, %v1202_v22  ;;  %vm1189_vm7 = vcmp.gt.f32.partialorder %v1179_v63, 0.0  ;;  %v1204_v1 = vsel %vm1188_vm6, %v1176_v49, %v1196_v27 }
 0x33c   :  { %v1262_v5 = vadd.f32 %v1255_v26, %v1254_v25  ;;  %v1259_v60 = vmul.f32 %v1242_v28, %v1203_v52  ;;  %v1205_v54 = vsel %vm1189_vm7, %v1179_v63, %v1197_v35  ;;  %v1260_v61 = vmul.f32 %v1247_v58, %v1204_v1 }
 0x33d   :  { %v1261_v21 = vmul.f32 %v1252_v19, %v1205_v54  ;;  %v1282_v33 = vshrl.u32 %v1281_v16, 7 }
 0x33e   :  { %v1263_v62 = vadd.f32 %v1262_v5, %v1256_v2 }
 0x33f   :  { %v1283_v14 = vsub.s32 0, %v1282_v33 }
 0x340   :  { %v1264_v10 = vadd.f32 %v1263_v62, %v1257_v23 }
 0x341   :  { %v1284_v18 = vrot.slane %v1279_v15, %v1283_v14 }
 0x342   :  { %v1265_v57 = vadd.f32 %v1264_v10, %v1258_v6 }
 0x344   :  { %v1266_v0 = vadd.f32 %v1265_v57, %v1259_v60 }
 0x346   :  { %v1267_v30 = vadd.f32 %v1266_v0, %v1260_v61 }
 0x348   :  { %v1268_v32 = vadd.f32 %v1267_v30, %v1261_v21 }
 0x34a   :  { %v1269_v39 = vrot.slane %v1268_v32, 4 }
 0x34c   :  { %v1270_v11 = vadd.f32 %v1269_v39, %v1268_v32 }
 0x34e   :  { %v1271_v13 = vrot.slane %v1270_v11, 2 }
 0x350   :  { %v1272_v29 = vadd.f32 %v1271_v13, %v1270_v11 }
 0x352   :  { %v1273_v17 = vrot.slane %v1272_v29, 1 }
 0x354   :  { %v1274_v40 = vadd.f32 %v1273_v17, %v1272_v29 }
 0x356   :  { %v1285_v36 = vadd.f32 %v1284_v18, %v1274_v40 }
 0x358   :  { %1286 = vst [vmem:[%s2091_s9] sm:$0x1] %v1285_v36 }

</bundles_post_ra>
